<compile_context>
chip_gen: v5e
topology: v5e:2x2
jax: 0.10.0
libtpu: 0.0.40
codegen_flags: <defaults>
</compile_context>

<pallas_src>
import functools

import jax
import jax.numpy as jnp
from jax.experimental import pallas as pl
from jax.experimental.pallas import tpu as pltpu


def _partialfc_kernel(x_ref, w_ref, o_ref):
    # x_ref: (B, E)   resident, gathered features
    # w_ref: (TN, E)  streamed tile of raw (un-normalized) class-center rows
    # o_ref: (B, TN)  logits tile (lane-dense: TN is a multiple of 128)
    w = w_ref[...]
    x = x_ref[...]

    # MXU operand dtype: bf16 weights stream into the MXU as bf16 (this is what halves
    # the dominant HBM stream); features are tiny so casting them is free.  f32 weights
    # are never silently downcast (f32 features/weights -> plain f32 matmul).
    if w.dtype == jnp.bfloat16:
        x = x.astype(jnp.bfloat16)   # documented precision tradeoff on the (B, E) operand
    else:
        w = w.astype(jnp.float32)
        x = x.astype(jnp.float32)

    # Un-normalized logits: contract the embedding dim of both operands directly
    # (NT matmul, no explicit .T, no XLU transpose), f32 accumulation on the MXU.
    raw = jax.lax.dot_general(
        x, w,
        dimension_numbers=(((1,), (1,)), ((), ())),
        preferred_element_type=jnp.float32,
    )                                                             # (B, TN) f32

    # Row L2 norms of the weight tile, delivered directly in (1, TN) lane layout by a
    # ones-row MXU contraction over w*w (f32 accumulate) -> no transpose / relayout,
    # and the (TN, E) tile is never rewritten (no normalized-weight temporary).
    w_sq = w * w                                                  # native-dtype square pass
    ones_row = jnp.ones((1, w_sq.shape[1]), w_sq.dtype)
    sq = jax.lax.dot_general(
        ones_row, w_sq,
        dimension_numbers=(((1,), (1,)), ((), ())),
        preferred_element_type=jnp.float32,
    )                                                             # (1, TN) f32

    # torch F.normalize semantics: w / max(||w||, 1e-12)  ==  raw * rsqrt(max(||w||^2, 1e-24)).
    # rsqrt runs on the EUP (free VLIW slot).
    inv = jax.lax.rsqrt(jnp.maximum(sq, 1e-24))                   # (1, TN)

    o_ref[...] = (raw * inv).astype(o_ref.dtype)                  # lane-dense unmasked store


def _round_up(x, m):
    return (x + m - 1) // m * m


def _vmem_capacity_bytes():
    """Physical VMEM per TensorCore; conservative 64 MiB (v7x) fallback."""
    try:
        cap = int(pltpu.get_tpu_info().vmem_capacity_bytes)
        if cap >= (32 << 20):
            return cap
    except Exception:
        pass
    return 64 << 20


def _choose_tile_n(C, E, w_itemsize, *, vmem_capacity,
                   min_tile_bytes=1 << 20, min_grid_steps=8):
    """Pick the class-tile size (rows per step, multiple of 128).

    * Weight-tile bytes target ~2 MiB on 64 MiB-VMEM chips (v7x) and ~4 MiB on
      128 MiB chips (v5e/v6e): big enough to amortize the ~0.35 us/step overhead,
      small enough that a triple-buffered stream + temporaries stays far below the
      scoped limit.
    * Keep >= min_grid_steps tiles (>= 4 per v7x megacore core on the 'parallel'
      class axis) ONLY when every tile would still carry >= min_tile_bytes of
      weights; splitting tiny problems costs more per-step overhead than it saves.
    """
    row_bytes = E * w_itemsize
    target_tile_bytes = (4 << 20) if vmem_capacity >= (96 << 20) else (2 << 20)
    c128 = _round_up(C, 128)

    tn = max(128, (target_tile_bytes // row_bytes) // 128 * 128)
    tn = min(tn, c128)

    steps = (c128 + tn - 1) // tn
    if steps < min_grid_steps:
        tn_split = max(128, _round_up(-(-c128 // min_grid_steps), 128))
        if tn_split * row_bytes >= min_tile_bytes:
            tn = min(tn, tn_split)
    return tn


@functools.partial(jax.jit, static_argnames=("tile_n",))
def partialfc_forward(features, weight, *, tile_n=None):
    """PartialFC forward: logits = total_features @ normalize(weight, dim=1).T

    features: (B, E) gathered features (f32 or bf16).
    weight:   (C, E) raw class-center rows (f32 or bf16; bf16 storage halves the
              dominant weight HBM stream — the kernel is weight-bandwidth bound
              at small B — while norm/scale math stays in f32).
    returns:  (B, C) f32 logits.
    """
    B, E = features.shape
    C, E2 = weight.shape
    assert E == E2, "embedding dims must match"

    w_itemsize = jnp.dtype(weight.dtype).itemsize
    x_itemsize = jnp.dtype(features.dtype).itemsize
    vmem_capacity = _vmem_capacity_bytes()

    if tile_n is None:
        tile_n = _choose_tile_n(C, E, w_itemsize, vmem_capacity=vmem_capacity)
    assert tile_n % 128 == 0, "tile_n must be a multiple of 128 (lane-dense output)"

    # Realistic PartialFC shards are rarely multiples of 128: pad the class axis so
    # tile_n divides it.  Zero rows produce exactly-zero logits and are sliced off.
    C_pad = _round_up(C, tile_n)
    if C_pad != C:
        weight = jnp.pad(weight, ((0, C_pad - C), (0, 0)))

    grid_steps = C_pad // tile_n
    # Deeper weight buffering only for long streams (>= 4 steps per v7x core).
    n_buf = 3 if grid_steps >= 8 else 2

    # VMEM accounting: everything that actually lives in VMEM, used to set the scoped
    # limit explicitly (the old version only counted the double-buffered weight stream).
    vmem_bytes = (
        n_buf * tile_n * E * w_itemsize      # streamed weight tile buffers
        + tile_n * E * w_itemsize            # in-kernel w*w temporary (native dtype)
        + 2 * B * E * x_itemsize             # resident features (conservatively x2)
        + 2 * B * tile_n * 4                 # double-buffered f32 output tiles
        + B * tile_n * 4                     # raw-logits f32 temporary
    )
    vmem_limit = int(min(max(vmem_bytes + (4 << 20), 16 << 20), vmem_capacity))

    cost = pl.CostEstimate(
        flops=2 * B * C_pad * E + 3 * C_pad * E,   # main matmul + square/ones-row norm
        transcendentals=C_pad,                     # one rsqrt per class row
        bytes_accessed=C_pad * E * w_itemsize + B * E * x_itemsize + B * C_pad * 4,
    )

    w_spec_kwargs = {}
    if n_buf != 2:
        w_spec_kwargs["pipeline_mode"] = pl.Buffered(n_buf)

    logits = pl.pallas_call(
        _partialfc_kernel,
        out_shape=jax.ShapeDtypeStruct((B, C_pad), jnp.float32),
        grid_spec=pltpu.PrefetchScalarGridSpec(
            num_scalar_prefetch=0,
            grid=(grid_steps,),
            in_specs=[
                pl.BlockSpec((B, E), lambda j: (0, 0)),        # features, VMEM-resident
                pl.BlockSpec((tile_n, E), lambda j: (j, 0),    # streamed raw weight tiles
                             **w_spec_kwargs),
            ],
            out_specs=pl.BlockSpec((B, tile_n), lambda j: (0, j)),   # lane-dense output
        ),
        compiler_params=pltpu.CompilerParams(
            dimension_semantics=("parallel",),   # class tiles shard across megacore TCs
            vmem_limit_bytes=vmem_limit,
        ),
        cost_estimate=cost,
    )(features, weight)

    return logits[:, :C] if C_pad != C else logits


if __name__ == "__main__":
    # Synthetic PartialFC config (world_size=1, rank=0, sample_rate=1.0):
    #   B = batch_size * world_size = 8, embedding_size = 128, num_local = 512
    B, E, C = 8, 128, 512

    key = jax.random.PRNGKey(0)
    k_feat, k_w = jax.random.split(key)

    # total_features as produced by the backbone / all_gather
    features = jax.random.normal(k_feat, (B, E), dtype=jnp.float32)
    # weight ~ Normal(0, 0.01), matching torch.normal(0, 0.01, (num_local, emb))
    weight = 0.01 * jax.random.normal(k_w, (C, E), dtype=jnp.float32)

    def ref_logits(f, w):
        wn = w / jnp.maximum(jnp.linalg.norm(w, axis=1, keepdims=True), 1e-12)
        return f @ wn.T

    ref = ref_logits(features, weight)

    # f32 weight path. Tolerance sized for the TPU's default (reduced-precision) f32
    # matmul, which both the kernel and the jnp reference go through.
    logits = partialfc_forward(features, weight)
    jax.block_until_ready(logits)
    assert logits.shape == (B, C)
    assert jnp.allclose(logits, ref, atol=2e-2, rtol=2e-2), "f32 path mismatch"

    # Multi-tile streaming path (grid of 4 class tiles).
    logits_tiled = partialfc_forward(features, weight, tile_n=128)
    jax.block_until_ready(logits_tiled)
    assert logits_tiled.shape == (B, C)
    assert jnp.allclose(logits_tiled, ref, atol=2e-2, rtol=2e-2), "tiled path mismatch"

    # bf16 weight-storage path (halves the dominant weight HBM stream; looser tolerance).
    logits_bf16 = partialfc_forward(features, weight.astype(jnp.bfloat16))
    jax.block_until_ready(logits_bf16)
    assert logits_bf16.shape == (B, C)
    assert jnp.allclose(logits_bf16, ref, atol=1e-1, rtol=1e-1), "bf16 path mismatch"

    # Non-multiple-of-128 class count exercises the wrapper-side padding path.
    C2 = 300
    weight2 = 0.01 * jax.random.normal(jax.random.PRNGKey(1), (C2, E), dtype=jnp.float32)
    logits2 = partialfc_forward(features, weight2)
    jax.block_until_ready(logits2)
    assert logits2.shape == (B, C2)
    assert jnp.allclose(logits2, ref_logits(features, weight2),
                        atol=2e-2, rtol=2e-2), "padded path mismatch"

    print("KERNEL_OK")
</pallas_src>

<mosaic_0001>
module attributes {stable_mosaic.version = 11 : i64} {
  func.func @_partialfc_kernel(%arg0: i32, %arg1: memref<8x128xf32, #tpu.memory_space<vmem>>, %arg2: memref<512x128xf32, #tpu.memory_space<vmem>>, %arg3: memref<8x512xf32, #tpu.memory_space<vmem>>) attributes {dimension_semantics = [#tpu.dimension_semantics<parallel>], iteration_bounds = array<i64: 1>, scalar_prefetch = 0 : i64, scratch_operands = 0 : i64, tpu.core_type = #tpu.core_type<tc>, window_params = [{pipeline_mode = #tpu.pipeline_mode<synchronous>, transform_indices = @transform_0, window_bounds = array<i64: 8, 128>}, {transform_indices = @transform_1, window_bounds = array<i64: 512, 128>}, {transform_indices = @transform_2, window_bounds = array<i64: 8, 512>}]} {
    %c0 = arith.constant 0 : index
    %c0_0 = arith.constant 0 : index
    %0 = vector.load %arg2[%c0, %c0_0] : memref<512x128xf32, #tpu.memory_space<vmem>>, vector<512x128xf32>
    %c0_1 = arith.constant 0 : index
    %c0_2 = arith.constant 0 : index
    %1 = vector.load %arg1[%c0_1, %c0_2] : memref<8x128xf32, #tpu.memory_space<vmem>>, vector<8x128xf32>
    %cst = arith.constant dense<0.000000e+00> : vector<8x512xf32>
    %2 = tpu.matmul %1, %0, %cst {dimension_numbers = #tpu.dot_dimension_numbers<[1], [1], [0], [0], [0, 0, 1, 0], [], []>} : vector<8x128xf32>, vector<512x128xf32>, vector<8x512xf32> -> vector<8x512xf32>
    %3 = arith.mulf %0, %0 : vector<512x128xf32>
    %cst_3 = arith.constant 1.000000e+00 : f32
    %4 = vector.broadcast %cst_3 : f32 to vector<1x128xf32>
    %cst_4 = arith.constant dense<0.000000e+00> : vector<1x512xf32>
    %5 = tpu.matmul %4, %3, %cst_4 {dimension_numbers = #tpu.dot_dimension_numbers<[1], [1], [0], [0], [0, 0, 1, 0], [], []>} : vector<1x128xf32>, vector<512x128xf32>, vector<1x512xf32> -> vector<1x512xf32>
    %cst_5 = arith.constant 1.000000e-24 : f32
    %6 = vector.broadcast %cst_5 : f32 to vector<1x512xf32>
    %7 = arith.maximumf %5, %6 : vector<1x512xf32>
    %8 = math.rsqrt %7 : vector<1x512xf32>
    %9 = vector.broadcast %8 : vector<1x512xf32> to vector<8x512xf32>
    %10 = arith.mulf %2, %9 : vector<8x512xf32>
    %c0_6 = arith.constant 0 : index
    %c0_7 = arith.constant 0 : index
    %11 = vector.load %arg3[%c0_6, %c0_7] : memref<8x512xf32, #tpu.memory_space<vmem>>, vector<8x512xf32>
    tpu.vector_store %arg3[%c0_6, %c0_7], %10 {strides = array<i32>} : memref<8x512xf32, #tpu.memory_space<vmem>>, vector<8x512xf32>,
    return
  }
  func.func @transform_0(%arg0: i32) -> (i32, i32) {
    %c0_i32 = arith.constant 0 : i32
    %c0_i32_0 = arith.constant 0 : i32
    %c0_i32_1 = arith.constant 0 : i32
    return %c0_i32, %c0_i32_0 : i32, i32
  }
  func.func @transform_1(%arg0: i32) -> (i32, i32) {
    %c0_i32 = arith.constant 0 : i32
    %c0_i32_0 = arith.constant 0 : i32
    return %arg0, %c0_i32 : i32, i32
  }
  func.func @transform_2(%arg0: i32) -> (i32, i32) {
    %c0_i32 = arith.constant 0 : i32
    %c0_i32_0 = arith.constant 0 : i32
    return %c0_i32, %arg0 : i32, i32
  }
}

</mosaic_0001>

<bundles_post_ra>
// kernel: partialfc_forward.1
= control target key start
LH: loop header
LB: loop body
LE: loop exit
PB: predicated region body
PF: predicated region fallthrough
CT: control target
= control target key end

     0   :  { %7 = vsyncpa [#allocation3], 0  ;;  %s853_s0 = inlined_call_operand.hbm [shape: f32[8,128], index: 0, kind: input, shape index: {}]   ;;  %s854_s1 = inlined_call_operand.hbm [shape: f32[512,128], index: 1, kind: input, shape index: {}]   ;;  %s855_s2 = inlined_call_operand.hbm [shape: f32[8,512], index: 2, kind: output, shape index: {}]  }
   0x1   :  { %8 = vsyncpa [#allocation6], 0 }
   0x2   :  { %9 = vsyncpa [#allocation4], 0  ;;  %s15_s11 = sshll.u32 %s853_s0, 4  ;;  %s497_s12 = smov [#allocation2]   ;;  %s16_s11 = int_to_ptr.hbm [resolvable:$true] %s15_s11 }
   0x3   :  { %s17_s13 = sshll.u32 %s497_s12, 4  ;;  %s25_s16 = sshll.u32 %s854_s1, 4  ;;  %s18_s13 = int_to_ptr.vmem [resolvable:$true] %s17_s13  ;;  %s26_s16 = int_to_ptr.hbm [resolvable:$true] %s25_s16 }
   0x4   :  { %20 = dma.hbm_to_vmem [thread:$0]  %s16_s11, 128, %s18_s13, [#allocation3]  }
   0x5   :  { %s498_s17 = smov [#allocation5]   ;;  %s499_s19 = smov 128  }
   0x6   :  { %s27_s18 = sshll.u32 %s498_s17, 4  ;;  %s500_s20 = smov 8   ;;  %s28_s18 = int_to_ptr.vmem [resolvable:$true] %s27_s18 }
   0x7   :  { %33 = dma.hbm_to_vmem [thread:$0]  %s26_s16, 8192, %s28_s18, [#allocation6], %s499_s19, %s499_s19, %s500_s20  }
   0x8   :  { %491 = dma.done.wait [#allocation3], 128  }
   0x9   :  { %492 = vsyncadd [#allocation3], 4294967168 }
   0xa   :  { %493 = dma.done.wait [#allocation6], 8192  }
   0xb   :  { %494 = vsyncadd [#allocation6], 4294959104  ;;  %v524_v0 = vld [vmem:[#allocation5 + $0x78] sm:$0xff]  ;;  %v536_v4 = vld [vmem:[#allocation5 + $0x70] sm:$0xff]  ;;  %s502_s0 = smov [#allocation7]   ;;  %s394_s23 = sshll.u32 %s855_s2, 4  ;;  %s395_s23 = int_to_ptr.hbm [resolvable:$true] %s394_s23 }
   0xc   :  { %v526_v1 = vld [vmem:[#allocation5 + $0xf8] sm:$0xff]  ;;  %107 = vmatpush.xpose.msra.mxu0 %v524_v0  ;;  %v538_v5 = vld [vmem:[#allocation5 + $0xf0] sm:$0xff]  ;;  %v548_v8 = vld [vmem:[#allocation5 + $0x68] sm:$0xff]  ;;  %s392_s1 = sshll.u32 %s502_s0, 4  ;;  %s393_s1 = int_to_ptr.vmem [resolvable:$true] %s392_s1 }
   0xd   :  { %v528_v2 = vld [vmem:[#allocation5 + $0x178] sm:$0xff]  ;;  %127 = vmatpush.xpose.msra.mxu1 %v526_v1  ;;  %v540_v6 = vld [vmem:[#allocation5 + $0x170] sm:$0xff]  ;;  %v550_v9 = vld [vmem:[#allocation5 + $0xe8] sm:$0xff] }
   0xe   :  { %v532_v3 = vld [vmem:[#allocation5 + $0x1f8] sm:$0xff]  ;;  %147 = vmatpush.xpose.msra.mxu2 %v528_v2  ;;  %v542_v7 = vld [vmem:[#allocation5 + $0x1f0] sm:$0xff]  ;;  %v552_v10 = vld [vmem:[#allocation5 + $0x168] sm:$0xff] }
   0xf   :  { %167 = vmatpush.xpose.msra.mxu3 %v532_v3  ;;  %v554_v11 = vld [vmem:[#allocation5 + $0x1e8] sm:$0xff]  ;;  %v560_v12 = vld [vmem:[#allocation5 + $0x60] sm:$0xff]  ;;  %v572_v16 = vld [vmem:[#allocation5 + $0x58] sm:$0xff] }
  0x10   :  { %108 = vmatpush.xpose.msra.mxu0 %v536_v4  ;;  %v562_v13 = vld [vmem:[#allocation5 + $0xe0] sm:$0xff]  ;;  %v574_v17 = vld [vmem:[#allocation5 + $0xd8] sm:$0xff]  ;;  %v584_v20 = vld [vmem:[#allocation5 + $0x50] sm:$0xff] }
  0x11   :  { %128 = vmatpush.xpose.msra.mxu1 %v538_v5  ;;  %v564_v14 = vld [vmem:[#allocation5 + $0x160] sm:$0xff]  ;;  %v576_v18 = vld [vmem:[#allocation5 + $0x158] sm:$0xff]  ;;  %v586_v21 = vld [vmem:[#allocation5 + $0xd0] sm:$0xff] }
  0x12   :  { %148 = vmatpush.xpose.msra.mxu2 %v540_v6  ;;  %v566_v15 = vld [vmem:[#allocation5 + $0x1e0] sm:$0xff]  ;;  %v578_v19 = vld [vmem:[#allocation5 + $0x1d8] sm:$0xff]  ;;  %v588_v22 = vld [vmem:[#allocation5 + $0x150] sm:$0xff] }
  0x13   :  { %168 = vmatpush.xpose.msra.mxu3 %v542_v7  ;;  %v590_v23 = vld [vmem:[#allocation5 + $0x1d0] sm:$0xff]  ;;  %v596_v24 = vld [vmem:[#allocation5 + $0x48] sm:$0xff]  ;;  %v608_v28 = vld [vmem:[#allocation5 + $0x40] sm:$0xff] }
  0x14   :  { %109 = vmatpush.xpose.msra.mxu0 %v548_v8  ;;  %v598_v25 = vld [vmem:[#allocation5 + $0xc8] sm:$0xff]  ;;  %v610_v29 = vld [vmem:[#allocation5 + $0xc0] sm:$0xff]  ;;  %v620_v32 = vld [vmem:[#allocation5 + $0x38] sm:$0xff] }
  0x15   :  { %129 = vmatpush.xpose.msra.mxu1 %v550_v9  ;;  %v600_v26 = vld [vmem:[#allocation5 + $0x148] sm:$0xff]  ;;  %v612_v30 = vld [vmem:[#allocation5 + $0x140] sm:$0xff]  ;;  %v622_v33 = vld [vmem:[#allocation5 + $0xb8] sm:$0xff] }
  0x16   :  { %149 = vmatpush.xpose.msra.mxu2 %v552_v10  ;;  %v602_v27 = vld [vmem:[#allocation5 + $0x1c8] sm:$0xff]  ;;  %v614_v31 = vld [vmem:[#allocation5 + $0x1c0] sm:$0xff]  ;;  %v624_v34 = vld [vmem:[#allocation5 + $0x138] sm:$0xff] }
  0x17   :  { %169 = vmatpush.xpose.msra.mxu3 %v554_v11  ;;  %v626_v35 = vld [vmem:[#allocation5 + $0x1b8] sm:$0xff]  ;;  %v632_v36 = vld [vmem:[#allocation5 + $0x30] sm:$0xff]  ;;  %v644_v40 = vld [vmem:[#allocation5 + $0x28] sm:$0xff] }
  0x18   :  { %110 = vmatpush.xpose.msra.mxu0 %v560_v12  ;;  %v634_v37 = vld [vmem:[#allocation5 + $0xb0] sm:$0xff]  ;;  %v646_v41 = vld [vmem:[#allocation5 + $0xa8] sm:$0xff]  ;;  %v656_v44 = vld [vmem:[#allocation5 + $0x20] sm:$0xff] }
  0x19   :  { %130 = vmatpush.xpose.msra.mxu1 %v562_v13  ;;  %v636_v38 = vld [vmem:[#allocation5 + $0x130] sm:$0xff]  ;;  %v648_v42 = vld [vmem:[#allocation5 + $0x128] sm:$0xff]  ;;  %v658_v45 = vld [vmem:[#allocation5 + $0xa0] sm:$0xff] }
  0x1a   :  { %150 = vmatpush.xpose.msra.mxu2 %v564_v14  ;;  %v638_v39 = vld [vmem:[#allocation5 + $0x1b0] sm:$0xff]  ;;  %v650_v43 = vld [vmem:[#allocation5 + $0x1a8] sm:$0xff]  ;;  %v660_v46 = vld [vmem:[#allocation5 + $0x120] sm:$0xff] }
  0x1b   :  { %170 = vmatpush.xpose.msra.mxu3 %v566_v15  ;;  %v662_v47 = vld [vmem:[#allocation5 + $0x1a0] sm:$0xff]  ;;  %v668_v48 = vld [vmem:[#allocation5 + $0x18] sm:$0xff]  ;;  %v680_v52 = vld [vmem:[#allocation5 + $0x10] sm:$0xff] }
  0x1c   :  { %111 = vmatpush.xpose.msra.mxu0 %v572_v16  ;;  %v670_v49 = vld [vmem:[#allocation5 + $0x98] sm:$0xff]  ;;  %v682_v53 = vld [vmem:[#allocation5 + $0x90] sm:$0xff]  ;;  %v692_v56 = vld [vmem:[#allocation5 + $0x8] sm:$0xff] }
  0x1d   :  { %131 = vmatpush.xpose.msra.mxu1 %v574_v17  ;;  %v672_v50 = vld [vmem:[#allocation5 + $0x118] sm:$0xff]  ;;  %v684_v54 = vld [vmem:[#allocation5 + $0x110] sm:$0xff]  ;;  %861 = vst [vmem:[#allocation12_spill] sm:$0xff] %v692_v56  ;;  %v694_v57 = vld [vmem:[#allocation5 + $0x88] sm:$0xff] }
  0x1e   :  { %151 = vmatpush.xpose.msra.mxu2 %v576_v18  ;;  %v674_v51 = vld [vmem:[#allocation5 + $0x198] sm:$0xff]  ;;  %v686_v55 = vld [vmem:[#allocation5 + $0x190] sm:$0xff]  ;;  %862 = vst [vmem:[#allocation13_spill] sm:$0xff] %v694_v57  ;;  %v696_v58 = vld [vmem:[#allocation5 + $0x108] sm:$0xff] }
  0x1f   :  { %171 = vmatpush.xpose.msra.mxu3 %v578_v19  ;;  %860 = vst [vmem:[#allocation11_spill] sm:$0xff] %v686_v55  ;;  %v698_v59 = vld [vmem:[#allocation5 + $0x188] sm:$0xff]  ;;  %v704_v60 = vld [vmem:[#allocation5] sm:$0xff] }
  0x20   :  { %112 = vmatpush.xpose.msra.mxu0 %v584_v20  ;;  %863 = vst [vmem:[#allocation14_spill] sm:$0xff] %v698_v59  ;;  %v706_v61 = vld [vmem:[#allocation5 + $0x80] sm:$0xff] }
  0x21   :  { %132 = vmatpush.xpose.msra.mxu1 %v586_v21  ;;  %v708_v62 = vld [vmem:[#allocation5 + $0x100] sm:$0xff] }
  0x22   :  { %152 = vmatpush.xpose.msra.mxu2 %v588_v22  ;;  %v710_v63 = vld [vmem:[#allocation5 + $0x180] sm:$0xff] }
  0x23   :  { %172 = vmatpush.xpose.msra.mxu3 %v590_v23 }
  0x24   :  { %113 = vmatpush.xpose.msra.mxu0 %v596_v24 }
  0x25   :  { %133 = vmatpush.xpose.msra.mxu1 %v598_v25 }
  0x26   :  { %153 = vmatpush.xpose.msra.mxu2 %v600_v26 }
  0x27   :  { %173 = vmatpush.xpose.msra.mxu3 %v602_v27 }
  0x28   :  { %114 = vmatpush.xpose.msra.mxu0 %v608_v28 }
  0x29   :  { %134 = vmatpush.xpose.msra.mxu1 %v610_v29 }
  0x2a   :  { %154 = vmatpush.xpose.msra.mxu2 %v612_v30 }
  0x2b   :  { %174 = vmatpush.xpose.msra.mxu3 %v614_v31 }
  0x2c   :  { %115 = vmatpush.xpose.msra.mxu0 %v620_v32 }
  0x2d   :  { %135 = vmatpush.xpose.msra.mxu1 %v622_v33 }
  0x2e   :  { %155 = vmatpush.xpose.msra.mxu2 %v624_v34 }
  0x2f   :  { %175 = vmatpush.xpose.msra.mxu3 %v626_v35 }
  0x30   :  { %116 = vmatpush.xpose.msra.mxu0 %v632_v36 }
  0x31   :  { %136 = vmatpush.xpose.msra.mxu1 %v634_v37 }
  0x32   :  { %156 = vmatpush.xpose.msra.mxu2 %v636_v38 }
  0x33   :  { %176 = vmatpush.xpose.msra.mxu3 %v638_v39 }
  0x34   :  { %117 = vmatpush.xpose.msra.mxu0 %v644_v40 }
  0x35   :  { %137 = vmatpush.xpose.msra.mxu1 %v646_v41 }
  0x36   :  { %157 = vmatpush.xpose.msra.mxu2 %v648_v42 }
  0x37   :  { %177 = vmatpush.xpose.msra.mxu3 %v650_v43 }
  0x38   :  { %118 = vmatpush.xpose.msra.mxu0 %v656_v44 }
  0x39   :  { %138 = vmatpush.xpose.msra.mxu1 %v658_v45 }
  0x3a   :  { %158 = vmatpush.xpose.msra.mxu2 %v660_v46 }
  0x3b   :  { %178 = vmatpush.xpose.msra.mxu3 %v662_v47 }
  0x3c   :  { %119 = vmatpush.xpose.msra.mxu0 %v668_v48 }
  0x3d   :  { %139 = vmatpush.xpose.msra.mxu1 %v670_v49 }
  0x3e   :  { %159 = vmatpush.xpose.msra.mxu2 %v672_v50 }
  0x3f   :  { %179 = vmatpush.xpose.msra.mxu3 %v674_v51 }
  0x40   :  { %120 = vmatpush.xpose.msra.mxu0 %v680_v52 }
  0x41   :  { %140 = vmatpush.xpose.msra.mxu1 %v682_v53 }
  0x42   :  { %160 = vmatpush.xpose.msra.mxu2 %v684_v54 }
  0x43   :  { %180 = vmatpush.xpose.msra.mxu3 %v686_v55  ;;  %v202_v55 = vmul.f32 %v524_v0, %v524_v0  ;;  %v201_v0 = vmul.f32 %v536_v4, %v536_v4  ;;  %v232_v4 = vmul.f32 %v552_v10, %v552_v10  ;;  %v198_v10 = vmul.f32 %v572_v16, %v572_v16 }
  0x44   :  { %121 = vmatpush.xpose.msra.mxu0 %v692_v56  ;;  %v218_v56 = vmul.f32 %v526_v1, %v526_v1  ;;  %v217_v1 = vmul.f32 %v538_v5, %v538_v5  ;;  %v248_v5 = vmul.f32 %v554_v11, %v554_v11  ;;  %v214_v11 = vmul.f32 %v574_v17, %v574_v17 }
  0x45   :  { %141 = vmatpush.xpose.msra.mxu1 %v694_v57  ;;  %v234_v57 = vmul.f32 %v528_v2, %v528_v2  ;;  %v233_v2 = vmul.f32 %v540_v6, %v540_v6  ;;  %v199_v6 = vmul.f32 %v560_v12, %v560_v12  ;;  %v230_v12 = vmul.f32 %v576_v18, %v576_v18 }
  0x46   :  { %161 = vmatpush.xpose.msra.mxu2 %v696_v58  ;;  %v229_v16 = vmul.f32 %v588_v22, %v588_v22  ;;  %v245_v17 = vmul.f32 %v590_v23, %v590_v23  ;;  %v196_v18 = vmul.f32 %v596_v24, %v596_v24  ;;  %v106_v22 = vld [vmem:[#allocation2] sm:$0xff]  ;;  %v195_v23 = vmul.f32 %v608_v28, %v608_v28 }
  0x47   :  { %181 = vmatpush.xpose.msra.mxu3 %v698_v59  ;;  %v250_v59 = vmul.f32 %v532_v3, %v532_v3  ;;  %v249_v3 = vmul.f32 %v542_v7, %v542_v7  ;;  %v215_v7 = vmul.f32 %v562_v13, %v562_v13  ;;  %v246_v13 = vmul.f32 %v578_v19, %v578_v19 }
  0x48   :  { %122 = vmatpush.xpose.msra.mxu0 %v704_v60  ;;  %v212_v19 = vmul.f32 %v598_v25, %v598_v25  ;;  %v211_v24 = vmul.f32 %v610_v29, %v610_v29  ;;  %v227_v25 = vmul.f32 %v612_v30, %v612_v30  ;;  %v226_v28 = vmul.f32 %v624_v34, %v624_v34 }
  0x49   :  { %142 = vmatpush.xpose.msra.mxu1 %v706_v61  ;;  %v242_v29 = vmul.f32 %v626_v35, %v626_v35  ;;  %v193_v30 = vmul.f32 %v632_v36, %v632_v36  ;;  %v192_v34 = vmul.f32 %v644_v40, %v644_v40  ;;  %v208_v35 = vmul.f32 %v646_v41, %v646_v41 }
  0x4a   :  { %162 = vmatpush.xpose.msra.mxu2 %v708_v62  ;;  %v224_v36 = vmul.f32 %v648_v42, %v648_v42  ;;  %v223_v40 = vmul.f32 %v660_v46, %v660_v46  ;;  %v239_v41 = vmul.f32 %v662_v47, %v662_v47  ;;  %v190_v42 = vmul.f32 %v668_v48, %v668_v48 }
  0x4b   :  { %182 = vmatpush.xpose.msra.mxu3 %v710_v63  ;;  %123 = vmatmul.f32.vlgmr.msra.gmra.mxu0 %v106_v22  ;;  %v189_v46 = vmul.f32 %v680_v52, %v680_v52  ;;  %v205_v47 = vmul.f32 %v682_v53, %v682_v53  ;;  %v221_v48 = vmul.f32 %v684_v54, %v684_v54  ;;  %v867_v53 = vld [vmem:[#allocation14_spill] sm:$0xff] }
  0x4c   :  { %251 = vmatpush.xpose.msrb.mxu0 %v202_v55  ;;  %v200_v55 = vmul.f32 %v548_v8, %v548_v8  ;;  %v231_v8 = vmul.f32 %v564_v14, %v564_v14  ;;  %v197_v14 = vmul.f32 %v584_v20, %v584_v20  ;;  %v228_v20 = vmul.f32 %v600_v26, %v600_v26 }
  0x4d   :  { %271 = vmatpush.xpose.msrb.mxu1 %v218_v56  ;;  %v216_v56 = vmul.f32 %v550_v9, %v550_v9  ;;  %v247_v9 = vmul.f32 %v566_v15, %v566_v15  ;;  %v213_v15 = vmul.f32 %v586_v21, %v586_v21  ;;  %v244_v21 = vmul.f32 %v602_v27, %v602_v27 }
  0x4e   :  { %291 = vmatpush.xpose.msrb.mxu2 %v234_v57  ;;  %143 = vmatmul.f32.vlgmr.msra.gmra.mxu1 %v106_v22  ;;  %v243_v26 = vmul.f32 %v614_v31, %v614_v31  ;;  %v194_v27 = vmul.f32 %v620_v32, %v620_v32  ;;  %v210_v57 = vmul.f32 %v622_v33, %v622_v33 }
  0x4f   :  { %311 = vmatpush.xpose.msrb.mxu3 %v250_v59  ;;  %163 = vmatmul.f32.vlgmr.msra.gmra.mxu2 %v106_v22  ;;  %v209_v31 = vmul.f32 %v634_v37, %v634_v37  ;;  %v225_v32 = vmul.f32 %v636_v38, %v636_v38  ;;  %v241_v33 = vmul.f32 %v638_v39, %v638_v39 }
  0x50   :  { %252 = vmatpush.xpose.msrb.mxu0 %v201_v0  ;;  %183 = vmatmul.f32.vlgmr.msra.gmra.mxu3 %v106_v22  ;;  %v240_v37 = vmul.f32 %v650_v43, %v650_v43  ;;  %v191_v38 = vmul.f32 %v656_v44, %v656_v44  ;;  %v207_v39 = vmul.f32 %v658_v45, %v658_v45  ;;  %v866_v0 = vld [vmem:[#allocation13_spill] sm:$0xff] }
  0x51   :  { %272 = vmatpush.xpose.msrb.mxu1 %v217_v1  ;;  %v206_v43 = vmul.f32 %v670_v49, %v670_v49  ;;  %v222_v44 = vmul.f32 %v672_v50, %v672_v50  ;;  %v238_v45 = vmul.f32 %v674_v51, %v674_v51  ;;  %v864_v49 = vld [vmem:[#allocation11_spill] sm:$0xff]  ;;  %v865_v50 = vld [vmem:[#allocation12_spill] sm:$0xff]  ;;  %v204_v1 = vmul.f32 %v866_v0, %v866_v0 }
  0x52   :  { %292 = vmatpush.xpose.msrb.mxu2 %v233_v2  ;;  %v237_v59 = vmul.f32 %v864_v49, %v864_v49  ;;  %v188_v51 = vmul.f32 %v865_v50, %v865_v50  ;;  %v220_v52 = vmul.f32 %v696_v58, %v696_v58  ;;  %v236_v2 = vmul.f32 %v867_v53, %v867_v53 }
  0x53   :  { %312 = vmatpush.xpose.msrb.mxu3 %v249_v3  ;;  %v187_v54 = vmul.f32 %v704_v60, %v704_v60  ;;  %v203_v3 = vmul.f32 %v706_v61, %v706_v61  ;;  %v501_v58 = vmov 1.0  }
  0x54   :  { %253 = vmatpush.xpose.msrb.mxu0 %v200_v55  ;;  %v219_v55 = vmul.f32 %v708_v62, %v708_v62 }
  0x55   :  { %273 = vmatpush.xpose.msrb.mxu1 %v216_v56  ;;  %v235_v56 = vmul.f32 %v710_v63, %v710_v63 }
  0x56   :  { %293 = vmatpush.xpose.msrb.mxu2 %v232_v4 }
  0x57   :  { %313 = vmatpush.xpose.msrb.mxu3 %v248_v5 }
  0x58   :  { %254 = vmatpush.xpose.msrb.mxu0 %v199_v6 }
  0x59   :  { %274 = vmatpush.xpose.msrb.mxu1 %v215_v7 }
  0x5a   :  { %294 = vmatpush.xpose.msrb.mxu2 %v231_v8 }
  0x5b   :  { %314 = vmatpush.xpose.msrb.mxu3 %v247_v9 }
  0x5c   :  { %255 = vmatpush.xpose.msrb.mxu0 %v198_v10 }
  0x5d   :  { %275 = vmatpush.xpose.msrb.mxu1 %v214_v11 }
  0x5e   :  { %295 = vmatpush.xpose.msrb.mxu2 %v230_v12 }
  0x5f   :  { %315 = vmatpush.xpose.msrb.mxu3 %v246_v13 }
  0x60   :  { %256 = vmatpush.xpose.msrb.mxu0 %v197_v14 }
  0x61   :  { %276 = vmatpush.xpose.msrb.mxu1 %v213_v15 }
  0x62   :  { %296 = vmatpush.xpose.msrb.mxu2 %v229_v16 }
  0x63   :  { %316 = vmatpush.xpose.msrb.mxu3 %v245_v17 }
  0x64   :  { %257 = vmatpush.xpose.msrb.mxu0 %v196_v18 }
  0x65   :  { %277 = vmatpush.xpose.msrb.mxu1 %v212_v19 }
  0x66   :  { %297 = vmatpush.xpose.msrb.mxu2 %v228_v20 }
  0x67   :  { %317 = vmatpush.xpose.msrb.mxu3 %v244_v21 }
  0x68   :  { %258 = vmatpush.xpose.msrb.mxu0 %v195_v23 }
  0x69   :  { %278 = vmatpush.xpose.msrb.mxu1 %v211_v24 }
  0x6a   :  { %298 = vmatpush.xpose.msrb.mxu2 %v227_v25 }
  0x6b   :  { %318 = vmatpush.xpose.msrb.mxu3 %v243_v26 }
  0x6c   :  { %259 = vmatpush.xpose.msrb.mxu0 %v194_v27 }
  0x6d   :  { %279 = vmatpush.xpose.msrb.mxu1 %v210_v57 }
  0x6e   :  { %299 = vmatpush.xpose.msrb.mxu2 %v226_v28 }
  0x6f   :  { %319 = vmatpush.xpose.msrb.mxu3 %v242_v29 }
  0x70   :  { %260 = vmatpush.xpose.msrb.mxu0 %v193_v30 }
  0x71   :  { %280 = vmatpush.xpose.msrb.mxu1 %v209_v31 }
  0x72   :  { %300 = vmatpush.xpose.msrb.mxu2 %v225_v32 }
  0x73   :  { %320 = vmatpush.xpose.msrb.mxu3 %v241_v33 }
  0x74   :  { %261 = vmatpush.xpose.msrb.mxu0 %v192_v34 }
  0x75   :  { %281 = vmatpush.xpose.msrb.mxu1 %v208_v35 }
  0x76   :  { %301 = vmatpush.xpose.msrb.mxu2 %v224_v36 }
  0x77   :  { %321 = vmatpush.xpose.msrb.mxu3 %v240_v37 }
  0x78   :  { %262 = vmatpush.xpose.msrb.mxu0 %v191_v38 }
  0x79   :  { %282 = vmatpush.xpose.msrb.mxu1 %v207_v39 }
  0x7a   :  { %302 = vmatpush.xpose.msrb.mxu2 %v223_v40 }
  0x7b   :  { %322 = vmatpush.xpose.msrb.mxu3 %v239_v41 }
  0x7c   :  { %263 = vmatpush.xpose.msrb.mxu0 %v190_v42 }
  0x7d   :  { %283 = vmatpush.xpose.msrb.mxu1 %v206_v43 }
  0x7e   :  { %303 = vmatpush.xpose.msrb.mxu2 %v222_v44 }
  0x7f   :  { %323 = vmatpush.xpose.msrb.mxu3 %v238_v45 }
  0x80   :  { %264 = vmatpush.xpose.msrb.mxu0 %v189_v46 }
  0x81   :  { %284 = vmatpush.xpose.msrb.mxu1 %v205_v47 }
  0x82   :  { %304 = vmatpush.xpose.msrb.mxu2 %v221_v48 }
  0x83   :  { %324 = vmatpush.xpose.msrb.mxu3 %v237_v59 }
  0x84   :  { %265 = vmatpush.xpose.msrb.mxu0 %v188_v51 }
  0x85   :  { %285 = vmatpush.xpose.msrb.mxu1 %v204_v1 }
  0x86   :  { %305 = vmatpush.xpose.msrb.mxu2 %v220_v52 }
  0x87   :  { %325 = vmatpush.xpose.msrb.mxu3 %v236_v2 }
  0x88   :  { %266 = vmatpush.xpose.msrb.mxu0 %v187_v54 }
  0x89   :  { %286 = vmatpush.xpose.msrb.mxu1 %v203_v3 }
  0x8a   :  { %306 = vmatpush.xpose.msrb.mxu2 %v219_v55 }
  0x8b   :  { %326 = vmatpush.xpose.msrb.mxu3 %v235_v56  ;;  %267 = vmatmul.f32.vlgmr.msrb.gmra.mxu0 %v501_v58 }
  0x8c   :  { %287 = vmatmul.f32.vlgmr.msrb.gmra.mxu1 %v501_v58 }
  0x8d   :  { %307 = vmatmul.f32.vlgmr.msrb.gmra.mxu2 %v501_v58 }
  0x8e   :  { %327 = vmatmul.f32.vlgmr.msrb.gmra.mxu3 %v501_v58 }
  0xc8   :  { %v124_v60 = vpop.f32.mrf.mxu0 }
  0xcb   :  { %v144_v4 = vpop.f32.mrf.mxu1 }
  0xd2   :  { %v844_v61 = vpop.f32.mrf.mxu2 }
  0xd3   :  { %v846_v5 = vpop.f32.mrf.mxu3 }
 0x108   :  { %v268_v6 = vpop.f32.mrf.mxu0 }
 0x109   :  { %v288_v62 = vpop.f32.mrf.mxu1  ;;  %v331_v7 = vmax.f32 %v268_v6, 1e-24 }
 0x10a   :  { %v332_v8 = vmax.f32 %v288_v62, 1e-24 }
 0x10b   :  { %411 = vrsqrt.f32 %v331_v7  ;;  %vm341_vm0 = vweird.f32 %v331_v7 }
 0x10c   :  { %413 = vrsqrt.f32 %v332_v8  ;;  %vm351_vm2 = vweird.f32 %v332_v8 }
 0x110   :  { %v308_v63 = vpop.f32.mrf.mxu2 }
 0x111   :  { %v328_v9 = vpop.f32.mrf.mxu3  ;;  %v333_v10 = vmax.f32 %v308_v63, 1e-24  ;;  %v412_v12 = vpop.eup %411 }
 0x112   :  { %v334_v11 = vmax.f32 %v328_v9, 1e-24  ;;  %v414_v13 = vpop.eup %413  ;;  %v336_v14 = vmul.f32 %v412_v12, %v331_v7  ;;  %vm342_vm1 = vweird.f32 %v412_v12 }
 0x113   :  { %415 = vrsqrt.f32 %v333_v10  ;;  %v346_v15 = vmul.f32 %v414_v13, %v332_v8  ;;  %vm352_vm3 = vweird.f32 %v414_v13  ;;  %vm343_vm4 = vmor %vm341_vm0, %vm342_vm1  ;;  %vm361_vm8 = vweird.f32 %v333_v10 }
 0x114   :  { %417 = vrsqrt.f32 %v334_v11  ;;  %v337_v16 = vmul.f32 %v412_v12, %v336_v14  ;;  %vm353_vm5 = vmor %vm351_vm2, %vm352_vm3  ;;  %vm371_vm10 = vweird.f32 %v334_v11 }
 0x115   :  { %v347_v17 = vmul.f32 %v414_v13, %v346_v15 }
 0x116   :  { %v338_v18 = vmul.f32 0.5, %v337_v16 }
 0x117   :  { %v348_v19 = vmul.f32 0.5, %v347_v17 }
 0x118   :  { %v339_v21 = vsub.f32 1.5, %v338_v18 }
 0x119   :  { %v416_v20 = vpop.eup %415  ;;  %v349_v23 = vsub.f32 1.5, %v348_v19 }
 0x11a   :  { %v418_v22 = vpop.eup %417  ;;  %v356_v24 = vmul.f32 %v416_v20, %v333_v10  ;;  %v340_v25 = vmul.f32 %v412_v12, %v339_v21  ;;  %vm362_vm6 = vweird.f32 %v416_v20 }
 0x11b   :  { %v366_v26 = vmul.f32 %v418_v22, %v334_v11  ;;  %v350_v27 = vmul.f32 %v414_v13, %v349_v23  ;;  %vm372_vm7 = vweird.f32 %v418_v22  ;;  %vm363_vm9 = vmor %vm361_vm8, %vm362_vm6 }
 0x11c   :  { %v357_v57 = vmul.f32 %v416_v20, %v356_v24  ;;  %v344_v28 = vsel %vm343_vm4, %v412_v12, %v340_v25  ;;  %vm373_vm11 = vmor %vm371_vm10, %vm372_vm7 }
 0x11d   :  { %v367_v29 = vmul.f32 %v418_v22, %v366_v26  ;;  %v375_v30 = vperm.slane %v344_v28, 0  ;;  %v354_v31 = vsel %vm353_vm5, %v414_v13, %v350_v27 }
 0x11e   :  { %v358_v32 = vmul.f32 0.5, %v357_v57  ;;  %v376_v33 = vperm.slane %v354_v31, 0 }
 0x11f   :  { %v368_v34 = vmul.f32 0.5, %v367_v29  ;;  %v379_v35 = vmul.f32 %v375_v30, %v124_v60 }
 0x120   :  { %v359_v36 = vsub.f32 1.5, %v358_v32  ;;  %v380_v37 = vmul.f32 %v376_v33, %v144_v4 }
 0x121   :  { %v369_v38 = vsub.f32 1.5, %v368_v34  ;;  %383 = vst [vmem:[#allocation7] sm:$0xff] %v379_v35 }
 0x122   :  { %v360_v39 = vmul.f32 %v416_v20, %v359_v36  ;;  %384 = vst [vmem:[#allocation7 + $0x8] sm:$0xff] %v380_v37 }
 0x123   :  { %v370_v40 = vmul.f32 %v418_v22, %v369_v38 }
 0x124   :  { %v364_v41 = vsel %vm363_vm9, %v416_v20, %v360_v39 }
 0x125   :  { %v377_v42 = vperm.slane %v364_v41, 0  ;;  %v374_v43 = vsel %vm373_vm11, %v418_v22, %v370_v40 }
 0x126   :  { %v378_v44 = vperm.slane %v374_v43, 0 }
 0x127   :  { %v381_v45 = vmul.f32 %v377_v42, %v844_v61 }
 0x128   :  { %v382_v46 = vmul.f32 %v378_v44, %v846_v5 }
 0x129   :  { %385 = vst [vmem:[#allocation7 + $0x10] sm:$0xff] %v381_v45 }
 0x12a   :  { %386 = vst [vmem:[#allocation7 + $0x18] sm:$0xff] %v382_v46 }
 0x12b   :  { %397 = dma.vmem_to_hbm [thread:$0]  %s393_s1, 512, %s395_s23, [#allocation4]  }
 0x12c   :  { %495 = dma.done.wait [#allocation4], 512  }
 0x12d   :  { %496 = vsyncadd [#allocation4], 4294966784 }
 0x12e   :  { %402 = vsyncpa [#allocation3], 1 }
 0x12f   :  { %403 = vsyncpa [#allocation6], 1 }
 0x130   :  { %404 = vsyncpa [#allocation4], 1 }

</bundles_post_ra>
